<compile_context>
chip_gen: v6e
topology: v6e:2x2x1
jax: 0.10.0
libtpu: 0.0.40
codegen_flags: <defaults>
</compile_context>

<pallas_src>
import jax
import jax.numpy as jnp
from jax.experimental import pallas as pl
from jax.experimental.pallas import tpu as pltpu

# ---------------- configuration (small, deterministic) ----------------
BATCH = 2
SENT_LEN = 8
WORD_VOCAB = 64
WORD_EMB_DIM = 32
FEAT_VOCABS = (8, 12)
FEAT_EMB_DIMS = (16, 16)
CHAR_VOCAB = 20
CHAR_EMB_DIM = 16
CHAR_HIDDEN = 32
WORD_LEN = 8          # chars per word
OUT_DIM = WORD_EMB_DIM + sum(FEAT_EMB_DIMS) + CHAR_HIDDEN        # 96
OUT_PAD = ((OUT_DIM + 127) // 128) * 128                         # 128 (lane-dense)
CHAR_OFF = WORD_EMB_DIM + sum(FEAT_EMB_DIMS)                     # 64 (char lanes 64:96)


# ---------------- fused Pallas kernel ----------------
def _wordrep_fused_kernel(ids_ref, wf_tab_ref, conv_tab_ref, out_ref):
    """Fused WordRep forward.

    ids_ref      : (L*T, 2) int32
                     col 0 : t-major char ids, row r = t*T + n, already
                             reordered by char_seq_recover in the wrapper
                     col 1 : rows 0:T word ids, T:2T feat0 ids, 2T:3T feat1 ids
    wf_tab_ref   : (Vw+Vf0+Vf1, 128) f32 block-diagonal, lane-offset table
    conv_tab_ref : (3*Vc+1, 128) f32 folded (char_emb @ conv_w) table; last
                   row is the conv bias; H columns live at lanes 64:96
    out_ref      : (T, 128) f32, columns [OUT_DIM:) are zero padding
    """
    f32 = jnp.float32
    i32 = jnp.int32
    T = out_ref.shape[0]
    NL = ids_ref.shape[0]
    L = NL // T
    VW, VF0, VF1 = WORD_VOCAB, FEAT_VOCABS[0], FEAT_VOCABS[1]
    VC = CHAR_VOCAB

    ids = ids_ref[...]                          # (NL, 2) int32
    cf = ids[:, 0:1]                            # (NL, 1) t-major char ids
    wf = ids[:, 1:2]                            # (NL, 1) packed word/feat ids
    wid = wf[0:T]                               # (T, 1)
    f0 = wf[T:2 * T]
    f1 = wf[2 * T:3 * T]

    # --- word + feature embeddings: ONE block-diagonal one-hot matmul ---
    # Combined vocab segments [0,VW) / [VW,VW+VF0) / [VW+VF0,VW+VF0+VF1) never
    # overlap, so a single iota + three compares builds the combined one-hot.
    col = jax.lax.broadcasted_iota(i32, (T, VW + VF0 + VF1), 1)
    oh_wf = ((col == wid) | (col == VW + f0) | (col == VW + VF0 + f1)).astype(f32)
    emb128 = jnp.dot(oh_wf, wf_tab_ref[...], preferred_element_type=f32)   # (T, 128)

    # --- char CNN: folded table, conv taps are +/-T row shifts (t-major) ---
    # Sentinel never matches any column (even after the +2*VC segment offset).
    sent = jnp.full((T, 1), -10 * VC, i32)
    prev = jnp.concatenate([sent, cf[:NL - T]], axis=0)   # char at position t-1
    nxt = jnp.concatenate([cf[T:], sent], axis=0)         # char at position t+1
    ccol = jax.lax.broadcasted_iota(i32, (NL, 3 * VC + 1), 1)
    oh_c = ((ccol == prev)                 # k=0 tap  -> rows [0,      VC)
            | (ccol == VC + cf)            # k=1 tap  -> rows [VC,   2*VC)
            | (ccol == 2 * VC + nxt)       # k=2 tap  -> rows [2*VC, 3*VC)
            | (ccol == 3 * VC)             # always-on bias row
            ).astype(f32)
    y = jnp.dot(oh_c, conv_tab_ref[...], preferred_element_type=f32)       # (NL, 128)

    # max-pool over word length: rows [t*T:(t+1)*T] hold position t of all
    # words (pure VPU maximums over static sublane slices, no XLU reduce).
    pooled = y[0:T]
    for t in range(1, L):
        pooled = jnp.maximum(pooled, y[t * T:(t + 1) * T])                 # (T, 128)

    # word/feat lanes [0:64) live in emb128, char lanes [64:96) in pooled,
    # everything else is exact zeros -> one add, one unmasked 128-lane store.
    out_ref[...] = emb128 + pooled


# ---------------- parameter packing (done ONCE, param-only work) ----------------
def pack_wordrep_params(params):
    f32 = jnp.float32
    VW, VF0, VF1 = WORD_VOCAB, FEAT_VOCABS[0], FEAT_VOCABS[1]
    DW, DF0, DF1 = WORD_EMB_DIM, FEAT_EMB_DIMS[0], FEAT_EMB_DIMS[1]
    H, VC = CHAR_HIDDEN, CHAR_VOCAB

    # block-diagonal word/feature table with final lane offsets baked in
    wf_table = jnp.zeros((VW + VF0 + VF1, OUT_PAD), f32)
    wf_table = wf_table.at[:VW, :DW].set(params['word_embedding'].astype(f32))
    wf_table = wf_table.at[VW:VW + VF0, DW:DW + DF0].set(
        params['feature_embeddings'][0].astype(f32))
    wf_table = wf_table.at[VW + VF0:, DW + DF0:DW + DF0 + DF1].set(
        params['feature_embeddings'][1].astype(f32))

    # fold char embedding into the conv weights: M[k, c, h] = sum_e emb[c,e] * w[k,e,h]
    # (HIGHEST precision so the fold itself matches the embed-then-conv reference)
    folded = jnp.einsum('ce,keh->kch',
                        params['char_embedding'].astype(f32),
                        params['char_cnn_w'].astype(f32),
                        precision=jax.lax.Precision.HIGHEST)           # (3, VC, H)
    conv_table = jnp.zeros((3 * VC + 1, OUT_PAD), f32)
    conv_table = conv_table.at[:3 * VC, CHAR_OFF:CHAR_OFF + H].set(
        folded.reshape(3 * VC, H))
    conv_table = conv_table.at[3 * VC, CHAR_OFF:CHAR_OFF + H].set(
        params['char_cnn_b'].reshape(H).astype(f32))
    return {'wf_table': wf_table, 'conv_table': conv_table}


# ---------------- wrapper ----------------
def wordrep_forward(packed_params, word_inputs, feature_inputs, word_seq_lengths,
                    char_inputs, char_seq_lengths, char_seq_recover,
                    batch_word_text=None):
    """Mirrors WordRep.forward (eval mode, CNN char extractor, no transformer)."""
    del word_seq_lengths, char_seq_lengths, batch_word_text  # unused on the CNN path
    B, S = word_inputs.shape
    T = B * S
    N, L = char_inputs.shape
    assert N == T and L >= 3

    # char_seq_recover applied on the int32 ids here (512 B gather) so the
    # kernel never needs a permutation matmul.
    char_reordered = char_inputs[char_seq_recover].astype(jnp.int32)       # (T, L)
    # t-major flat layout: row r = t*T + n  (conv taps become +/-T row shifts)
    char_t = jnp.transpose(char_reordered).reshape(L * T, 1)

    # pack ALL int ids into one (L*T, 2) array -> a single tiny input DMA
    wf_col = jnp.concatenate(
        [word_inputs.reshape(T).astype(jnp.int32),
         feature_inputs[0].reshape(T).astype(jnp.int32),
         feature_inputs[1].reshape(T).astype(jnp.int32),
         jnp.zeros((L * T - 3 * T,), jnp.int32)], axis=0).reshape(L * T, 1)
    ids_packed = jnp.concatenate([char_t, wf_col], axis=1)                 # (L*T, 2)

    out_padded = pl.pallas_call(
        _wordrep_fused_kernel,
        out_shape=jax.ShapeDtypeStruct((T, OUT_PAD), jnp.float32),
        in_specs=[pl.BlockSpec(memory_space=pltpu.MemorySpace.VMEM)] * 3,
        out_specs=pl.BlockSpec(memory_space=pltpu.MemorySpace.VMEM),
    )(ids_packed, packed_params['wf_table'], packed_params['conv_table'])

    # Module-faithful return shape.  If the consumer tolerates padded lanes,
    # return out_padded directly and skip this non-lane-dense slice/copy.
    out = out_padded[:, :OUT_DIM].reshape(B, S, OUT_DIM)
    # TODO(synk): nn.Dropout(p) in training mode (pltpu.prng_* mask + 1/(1-p)
    #             scale inside the kernel); eval mode => identity.
    return out


# ---------------- deterministic parameter init ----------------
def init_params(key):
    ks = jax.random.split(key, 6)

    def rand_emb(k, vocab, dim):  # mirrors WordRep.random_embedding
        scale = (3.0 / dim) ** 0.5
        return jax.random.uniform(k, (vocab, dim), jnp.float32, -scale, scale)

    return {
        'word_embedding': rand_emb(ks[0], WORD_VOCAB, WORD_EMB_DIM),
        'feature_embeddings': [rand_emb(ks[1], FEAT_VOCABS[0], FEAT_EMB_DIMS[0]),
                               rand_emb(ks[2], FEAT_VOCABS[1], FEAT_EMB_DIMS[1])],
        'char_embedding': rand_emb(ks[3], CHAR_VOCAB, CHAR_EMB_DIM),
        # conv weight (K=3, E, H); torch weight (H, E, K): w[k, e, h] = W_torch[h, e, k]
        'char_cnn_w': jax.random.uniform(ks[4], (3, CHAR_EMB_DIM, CHAR_HIDDEN),
                                         jnp.float32, -0.1, 0.1),
        'char_cnn_b': jax.random.uniform(ks[5], (1, CHAR_HIDDEN),
                                         jnp.float32, -0.1, 0.1),
    }


# ---------------- demo ----------------
if __name__ == "__main__":
    key = jax.random.PRNGKey(0)
    pkey, dkey = jax.random.split(key)
    params = init_params(pkey)
    packed_params = pack_wordrep_params(params)

    dks = jax.random.split(dkey, 5)
    word_inputs = jax.random.randint(dks[0], (BATCH, SENT_LEN), 0, WORD_VOCAB, jnp.int32)
    feature_inputs = [
        jax.random.randint(dks[1], (BATCH, SENT_LEN), 0, FEAT_VOCABS[0], jnp.int32),
        jax.random.randint(dks[2], (BATCH, SENT_LEN), 0, FEAT_VOCABS[1], jnp.int32),
    ]
    word_seq_lengths = jnp.full((BATCH,), SENT_LEN, jnp.int32)
    char_inputs = jax.random.randint(dks[3], (BATCH * SENT_LEN, WORD_LEN), 0,
                                     CHAR_VOCAB, jnp.int32)
    char_seq_lengths = jnp.full((BATCH * SENT_LEN,), WORD_LEN, jnp.int32)
    char_seq_recover = jax.random.permutation(dks[4], BATCH * SENT_LEN).astype(jnp.int32)

    out = wordrep_forward(packed_params, word_inputs, feature_inputs, word_seq_lengths,
                          char_inputs, char_seq_lengths, char_seq_recover)
    out = jax.block_until_ready(out)
    assert out.shape == (BATCH, SENT_LEN, OUT_DIM), out.shape
    assert out.dtype == jnp.float32
    assert bool(jnp.all(jnp.isfinite(out)))

    # Cross-check against a pure-JAX reference of the same module semantics
    # (embed -> conv1d(k=3, pad=1) -> max-pool -> recover -> concat).
    def ref_forward():
        T = BATCH * SENT_LEN
        hi = jax.lax.Precision.HIGHEST
        we = params['word_embedding'][word_inputs.reshape(T)]
        f0 = params['feature_embeddings'][0][feature_inputs[0].reshape(T)]
        f1 = params['feature_embeddings'][1][feature_inputs[1].reshape(T)]
        ce = params['char_embedding'][char_inputs]                       # (N, L, E)
        cep = jnp.pad(ce, ((0, 0), (1, 1), (0, 0)))                      # pad=1
        w = params['char_cnn_w']                                         # (3, E, H)
        conv = (jnp.einsum('nle,eh->nlh', cep[:, 0:WORD_LEN], w[0], precision=hi)
                + jnp.einsum('nle,eh->nlh', cep[:, 1:WORD_LEN + 1], w[1], precision=hi)
                + jnp.einsum('nle,eh->nlh', cep[:, 2:WORD_LEN + 2], w[2], precision=hi)
                + params['char_cnn_b'][0])
        # NOTE: char_seq_lengths intentionally ignored (NCRF++ CharCNN pools
        # over the whole padded word length).
        cf = jnp.max(conv, axis=1)[char_seq_recover]
        return jnp.concatenate([we, f0, f1, cf], axis=1).reshape(BATCH, SENT_LEN, OUT_DIM)

    ref = jax.block_until_ready(ref_forward())
    assert bool(jnp.allclose(out, ref, atol=1e-5, rtol=1e-5))
    print("KERNEL_OK")
</pallas_src>

<mosaic_0001>
module attributes {stable_mosaic.version = 11 : i64} {
  func.func @_wordrep_fused_kernel(%arg0: memref<128x2xi32, #tpu.memory_space<vmem>>, %arg1: memref<84x128xf32, #tpu.memory_space<vmem>>, %arg2: memref<61x128xf32, #tpu.memory_space<vmem>>, %arg3: memref<16x128xf32, #tpu.memory_space<vmem>>) attributes {dimension_semantics = [], scalar_prefetch = 0 : i64, scratch_operands = 0 : i64, tpu.core_type = #tpu.core_type<tc>} {
    %c0 = arith.constant 0 : index
    %c0_0 = arith.constant 0 : index
    %0 = vector.load %arg0[%c0, %c0_0] : memref<128x2xi32, #tpu.memory_space<vmem>>, vector<128x2xi32>
    %1 = vector.extract_strided_slice %0 {offsets = [0, 0], sizes = [128, 1], strides = [1, 1]} : vector<128x2xi32> to vector<128x1xi32>
    %2 = vector.extract_strided_slice %0 {offsets = [0, 1], sizes = [128, 1], strides = [1, 1]} : vector<128x2xi32> to vector<128x1xi32>
    %3 = vector.extract_strided_slice %2 {offsets = [0, 0], sizes = [16, 1], strides = [1, 1]} : vector<128x1xi32> to vector<16x1xi32>
    %4 = vector.extract_strided_slice %2 {offsets = [16, 0], sizes = [16, 1], strides = [1, 1]} : vector<128x1xi32> to vector<16x1xi32>
    %5 = vector.extract_strided_slice %2 {offsets = [32, 0], sizes = [16, 1], strides = [1, 1]} : vector<128x1xi32> to vector<16x1xi32>
    %6 = tpu.iota {dimensions = array<i32: 1>} : vector<16x84xi32>
    %7 = vector.broadcast %3 : vector<16x1xi32> to vector<16x84xi32>
    %8 = arith.cmpi eq, %6, %7 : vector<16x84xi32>
    %c64_i32 = arith.constant 64 : i32
    %9 = vector.broadcast %c64_i32 : i32 to vector<16x1xi32>
    %10 = arith.addi %9, %4 : vector<16x1xi32>
    %11 = vector.broadcast %10 : vector<16x1xi32> to vector<16x84xi32>
    %12 = arith.cmpi eq, %6, %11 : vector<16x84xi32>
    %13 = arith.ori %8, %12 : vector<16x84xi1>
    %c72_i32 = arith.constant 72 : i32
    %14 = vector.broadcast %c72_i32 : i32 to vector<16x1xi32>
    %15 = arith.addi %14, %5 : vector<16x1xi32>
    %16 = vector.broadcast %15 : vector<16x1xi32> to vector<16x84xi32>
    %17 = arith.cmpi eq, %6, %16 : vector<16x84xi32>
    %18 = arith.ori %13, %17 : vector<16x84xi1>
    %19 = arith.extui %18 : vector<16x84xi1> to vector<16x84xi32>
    %20 = arith.sitofp %19 : vector<16x84xi32> to vector<16x84xf32>
    %c0_1 = arith.constant 0 : index
    %c0_2 = arith.constant 0 : index
    %21 = vector.load %arg1[%c0_1, %c0_2] : memref<84x128xf32, #tpu.memory_space<vmem>>, vector<84x128xf32>
    %cst = arith.constant dense<0.000000e+00> : vector<16x128xf32>
    %22 = tpu.matmul %20, %21, %cst {dimension_numbers = #tpu.dot_dimension_numbers<[1], [0], [0], [1], [0, 0, 1, 1], [], []>} : vector<16x84xf32>, vector<84x128xf32>, vector<16x128xf32> -> vector<16x128xf32>
    %c-200_i32 = arith.constant -200 : i32
    %23 = vector.broadcast %c-200_i32 : i32 to vector<16x1xi32>
    %24 = vector.extract_strided_slice %1 {offsets = [0, 0], sizes = [112, 1], strides = [1, 1]} : vector<128x1xi32> to vector<112x1xi32>
    %25 = tpu.concatenate %23, %24 in 0 : vector<16x1xi32>, vector<112x1xi32> -> vector<128x1xi32>
    %26 = vector.extract_strided_slice %1 {offsets = [16, 0], sizes = [112, 1], strides = [1, 1]} : vector<128x1xi32> to vector<112x1xi32>
    %27 = tpu.concatenate %26, %23 in 0 : vector<112x1xi32>, vector<16x1xi32> -> vector<128x1xi32>
    %28 = tpu.iota {dimensions = array<i32: 1>} : vector<128x61xi32>
    %29 = vector.broadcast %25 : vector<128x1xi32> to vector<128x61xi32>
    %30 = arith.cmpi eq, %28, %29 : vector<128x61xi32>
    %c20_i32 = arith.constant 20 : i32
    %31 = vector.broadcast %c20_i32 : i32 to vector<128x1xi32>
    %32 = arith.addi %31, %1 : vector<128x1xi32>
    %33 = vector.broadcast %32 : vector<128x1xi32> to vector<128x61xi32>
    %34 = arith.cmpi eq, %28, %33 : vector<128x61xi32>
    %35 = arith.ori %30, %34 : vector<128x61xi1>
    %c40_i32 = arith.constant 40 : i32
    %36 = vector.broadcast %c40_i32 : i32 to vector<128x1xi32>
    %37 = arith.addi %36, %27 : vector<128x1xi32>
    %38 = vector.broadcast %37 : vector<128x1xi32> to vector<128x61xi32>
    %39 = arith.cmpi eq, %28, %38 : vector<128x61xi32>
    %40 = arith.ori %35, %39 : vector<128x61xi1>
    %c60_i32 = arith.constant 60 : i32
    %41 = vector.broadcast %c60_i32 : i32 to vector<128x61xi32>
    %42 = arith.cmpi eq, %28, %41 : vector<128x61xi32>
    %43 = arith.ori %40, %42 : vector<128x61xi1>
    %44 = arith.extui %43 : vector<128x61xi1> to vector<128x61xi32>
    %45 = arith.sitofp %44 : vector<128x61xi32> to vector<128x61xf32>
    %c0_3 = arith.constant 0 : index
    %c0_4 = arith.constant 0 : index
    %46 = vector.load %arg2[%c0_3, %c0_4] : memref<61x128xf32, #tpu.memory_space<vmem>>, vector<61x128xf32>
    %cst_5 = arith.constant dense<0.000000e+00> : vector<128x128xf32>
    %47 = tpu.matmul %45, %46, %cst_5 {dimension_numbers = #tpu.dot_dimension_numbers<[1], [0], [0], [1], [0, 0, 1, 1], [], []>} : vector<128x61xf32>, vector<61x128xf32>, vector<128x128xf32> -> vector<128x128xf32>
    %48 = vector.extract_strided_slice %47 {offsets = [0, 0], sizes = [16, 128], strides = [1, 1]} : vector<128x128xf32> to vector<16x128xf32>
    %49 = vector.extract_strided_slice %47 {offsets = [16, 0], sizes = [16, 128], strides = [1, 1]} : vector<128x128xf32> to vector<16x128xf32>
    %50 = arith.maximumf %48, %49 : vector<16x128xf32>
    %51 = vector.extract_strided_slice %47 {offsets = [32, 0], sizes = [16, 128], strides = [1, 1]} : vector<128x128xf32> to vector<16x128xf32>
    %52 = arith.maximumf %50, %51 : vector<16x128xf32>
    %53 = vector.extract_strided_slice %47 {offsets = [48, 0], sizes = [16, 128], strides = [1, 1]} : vector<128x128xf32> to vector<16x128xf32>
    %54 = arith.maximumf %52, %53 : vector<16x128xf32>
    %55 = vector.extract_strided_slice %47 {offsets = [64, 0], sizes = [16, 128], strides = [1, 1]} : vector<128x128xf32> to vector<16x128xf32>
    %56 = arith.maximumf %54, %55 : vector<16x128xf32>
    %57 = vector.extract_strided_slice %47 {offsets = [80, 0], sizes = [16, 128], strides = [1, 1]} : vector<128x128xf32> to vector<16x128xf32>
    %58 = arith.maximumf %56, %57 : vector<16x128xf32>
    %59 = vector.extract_strided_slice %47 {offsets = [96, 0], sizes = [16, 128], strides = [1, 1]} : vector<128x128xf32> to vector<16x128xf32>
    %60 = arith.maximumf %58, %59 : vector<16x128xf32>
    %61 = vector.extract_strided_slice %47 {offsets = [112, 0], sizes = [16, 128], strides = [1, 1]} : vector<128x128xf32> to vector<16x128xf32>
    %62 = arith.maximumf %60, %61 : vector<16x128xf32>
    %63 = arith.addf %22, %62 : vector<16x128xf32>
    %c0_6 = arith.constant 0 : index
    %c0_7 = arith.constant 0 : index
    %64 = vector.load %arg3[%c0_6, %c0_7] : memref<16x128xf32, #tpu.memory_space<vmem>>, vector<16x128xf32>
    tpu.vector_store %arg3[%c0_6, %c0_7], %63 {strides = array<i32>} : memref<16x128xf32, #tpu.memory_space<vmem>>, vector<16x128xf32>,
    return
  }
}

</mosaic_0001>

<bundles_post_ra>
// kernel: tpu_custom_call.1
= control target key start
LH: loop header
LB: loop body
LE: loop exit
PB: predicated region body
PF: predicated region fallthrough
CT: control target
= control target key end

     0   :  { %8 = vsyncpa [#allocation3], 0  ;;  %s1186_s0 = inlined_call_operand.vmem [shape: s32[128,2], index: 0, kind: input, shape index: {}]   ;;  %s1187_s1 = inlined_call_operand.vmem [shape: f32[84,128], index: 1, kind: input, shape index: {}]   ;;  %s1188_s2 = inlined_call_operand.hbm [shape: f32[61,128], index: 2, kind: input, shape index: {}]   ;;  %s1189_s3 = inlined_call_operand.hbm [shape: f32[16,128], index: 3, kind: output, shape index: {}]  }
   0x1   :  { %9 = vsyncpa [#allocation4], 0  ;;  %s910_s12 = smov [#allocation2]  }
   0x2   :  { %s19_s13 = sshll.u32 %s910_s12, 4  ;;  %s20_s13 = int_to_ptr.vmem [resolvable:$true] %s19_s13 }
   0x3   :  { %s874_s14 = scalar_lea.vmem %s20_s13, 1024  ;;  %p879_p1 = scmp.lt.s32.totalorder %s20_s13, %s20_s13 }
   0x4   :  { %p875_p0 = scmp.ne.s32.totalorder %s20_s13, %s874_s14  ;;  %p880_p2 = scmp.lt.s32.totalorder %s874_s14, %s874_s14 }
   0x6   :  { %p881_p3 = por %p880_p2, %p879_p1 }
   0x8   :  { %p882_p4 = pnand %p881_p3, %p875_p0 }
   0xa   :  { %885 = shalt.err (!%p882_p4)
}
   0xb   :  { %s911_s15 = smov 128   ;;  %s912_s16 = smov 8  }
   0xc   :  { %25 = dma.hbm_to_vmem [thread:$0]  %s1188_s2, 1024, %s20_s13, [#allocation3], %s911_s15, %s911_s15, %s912_s16  }
   0xd   :  { %906 = dma.done.wait [#allocation3], 1024  }
   0xe   :  { %907 = vsyncadd [#allocation3], 4294966272  ;;  %v913_v0 = vmov 0   ;;  %v948_v1 = vld [vmem:[%s1186_s0] sm:$0xff]  ;;  %v953_v2 = vld [vmem:[%s1186_s0 + $0x8] sm:$0xff]  ;;  %vm446_vm0 = vcmask 1044480  }
   0xf   :  { %861 = vset.pattern.permute.xlu0 %v913_v0  ;;  %862 = vset.pattern.permute.xlu1 %v913_v0  ;;  %v958_v3 = vld [vmem:[%s1186_s0 + $0x18] sm:$0xff]  ;;  %v155_v4 = vadd.s32 20, %v953_v2  ;;  %v154_v5 = vadd.s32 20, %v948_v1  ;;  %v966_v6 = vld [vmem:[%s1186_s0 + $0x10] sm:$0xff]  ;;  %v974_v12 = vld [vmem:[%s1186_s0 + $0x20] sm:$0xff]  ;;  %vm616_vm1 = vcmask 1043456  }
  0x10   :  { %98 = vperm.xlu0 %861, %v948_v1   ;;  %v251_v7 = vadd.s32 40, %v958_v3  ;;  %v250_v8 = vadd.s32 40, %v966_v6  ;;  %v156_v9 = vadd.s32 20, %v966_v6  ;;  %v396_v10 = vld [vmem:[#allocation2 + $0x38] sm:$0x1f]  ;;  %v395_v11 = vld [vmem:[#allocation2 + $0x30] sm:$0xff] }
  0x11   :  { %174 = vperm.xlu1 %862, %v155_v4   ;;  %789 = vmatprep.subr.msk.mxu0 %vm446_vm0, %v396_v10  ;;  %v394_v13 = vld [vmem:[#allocation2 + $0x28] sm:$0xff]  ;;  %v157_v14 = vadd.s32 20, %v958_v3  ;;  %v393_v16 = vld [vmem:[#allocation2 + $0x20] sm:$0xff]  ;;  %v252_v17 = vadd.s32 40, %v974_v12  ;;  %v392_v18 = vld [vmem:[#allocation2 + $0x18] sm:$0xff]  ;;  %v158_v22 = vadd.s32 20, %v974_v12 }
  0x12   :  { %790 = vmatpush3.msk.msra.mxu0 %vm446_vm0, %v396_v10  ;;  %v980_v15 = vld [vmem:[%s1186_s0 + $0x28] sm:$0xff]  ;;  %v391_v20 = vld [vmem:[#allocation2 + $0x10] sm:$0xff]  ;;  %v389_v23 = vld [vmem:[#allocation2] sm:$0xff]  ;;  %v55_v61 = vadd.s32 64, %v966_v6  ;;  %v914_v62 = vmov 1   ;;  %v56_v4 = vadd.s32 64, %v958_v3 }
  0x13   :  { %791 = vmatprep.subr.mxu0 %v395_v11  ;;  %v253_v19 = vadd.s32 40, %v980_v15  ;;  %v390_v21 = vld [vmem:[#allocation2 + $0x8] sm:$0xff]  ;;  %v35_v24 = vld [vmem:[%s1186_s0 + $0x30] sm:$0xff]  ;;  %v159_v25 = vadd.s32 20, %v980_v15  ;;  %v36_v26 = vld [vmem:[%s1186_s0 + $0x38] sm:$0xff]  ;;  %vm397_vm10 = vcmask 498688  }
  0x14   :  { %171 = vperm.xlu0 %861, %v154_v5   ;;  %792 = vmatpush3.msra.mxu0 %v395_v11  ;;  %v254_v27 = vadd.s32 40, %v35_v24  ;;  %v255_v28 = vadd.s32 40, %v36_v26  ;;  %v160_v29 = vadd.s32 20, %v35_v24  ;;  %v37_v30 = vld [vmem:[%s1186_s0 + $0x40] sm:$0xff]  ;;  %v161_v31 = vadd.s32 20, %v36_v26  ;;  %v38_v32 = vld [vmem:[%s1186_s0 + $0x48] sm:$0xff] }
  0x15   :  { %268 = vperm.xlu1 %862, %v251_v7   ;;  %793 = vmatprep.subr.mxu0 %v394_v13  ;;  %v256_v33 = vadd.s32 40, %v37_v30  ;;  %v257_v34 = vadd.s32 40, %v38_v32  ;;  %v162_v35 = vadd.s32 20, %v37_v30  ;;  %v39_v36 = vld [vmem:[%s1186_s0 + $0x50] sm:$0xff]  ;;  %v163_v37 = vadd.s32 20, %v38_v32  ;;  %v40_v38 = vld [vmem:[%s1186_s0 + $0x58] sm:$0xff] }
  0x16   :  { %794 = vmatpush3.msra.mxu0 %v394_v13  ;;  %v258_v39 = vadd.s32 40, %v39_v36  ;;  %v259_v40 = vadd.s32 40, %v40_v38  ;;  %v164_v41 = vadd.s32 20, %v39_v36  ;;  %v41_v42 = vld [vmem:[%s1186_s0 + $0x60] sm:$0xff]  ;;  %v165_v43 = vadd.s32 20, %v40_v38  ;;  %v42_v44 = vld [vmem:[%s1186_s0 + $0x68] sm:$0xff] }
  0x17   :  { %795 = vmatprep.subr.mxu0 %v393_v16  ;;  %v260_v45 = vadd.s32 40, %v41_v42  ;;  %v261_v46 = vadd.s32 40, %v42_v44  ;;  %v166_v47 = vadd.s32 20, %v41_v42  ;;  %v43_v48 = vld [vmem:[%s1186_s0 + $0x70] sm:$0xff]  ;;  %v167_v49 = vadd.s32 20, %v42_v44  ;;  %v44_v50 = vld [vmem:[%s1186_s0 + $0x78] sm:$0xff] }
  0x18   :  { %265 = vperm.xlu0 %861, %v250_v8   ;;  %796 = vmatpush3.msra.mxu0 %v393_v16  ;;  %v262_v51 = vadd.s32 40, %v43_v48  ;;  %v263_v52 = vadd.s32 40, %v44_v50  ;;  %v93_v53 = vld [vmem:[%s1187_s1 + $0x50] sm:$0xf]  ;;  %v168_v54 = vadd.s32 20, %v43_v48  ;;  %v92_v55 = vld [vmem:[%s1187_s1 + $0x48] sm:$0xff] }
  0x19   :  { %177 = vperm.xlu1 %862, %v156_v9   ;;  %797 = vmatprep.subr.mxu0 %v392_v18  ;;  %v91_v56 = vld [vmem:[%s1187_s1 + $0x40] sm:$0xff]  ;;  %v169_v57 = vadd.s32 20, %v44_v50  ;;  %v90_v58 = vld [vmem:[%s1187_s1 + $0x38] sm:$0xff]  ;;  %v89_v59 = vld [vmem:[%s1187_s1 + $0x30] sm:$0xff]  ;;  %v68_v7 = vadd.s32 72, %v980_v15  ;;  %v45_v9 = vlaneseq  ;;  %v915_v16 = vmov 0.0  }
  0x1a   :  { %798 = vmatpush3.msra.mxu0 %v392_v18  ;;  %829 = vmatprep.subr.msk.mxu1 %vm616_vm1, %v93_v53  ;;  %v88_v60 = vld [vmem:[%s1187_s1 + $0x28] sm:$0xff]  ;;  %v87_v63 = vld [vmem:[%s1187_s1 + $0x20] sm:$0xff]  ;;  %v86_v5 = vld [vmem:[%s1187_s1 + $0x18] sm:$0xff] }
  0x1b   :  { %799 = vmatprep.subr.mxu0 %v391_v20  ;;  %830 = vmatpush3.msk.msra.mxu1 %vm616_vm1, %v93_v53  ;;  %v83_v8 = vld [vmem:[%s1187_s1] sm:$0xff]  ;;  %v1061_v13 = vand.u32 127, %v45_v9 }
  0x1c   :  { %101 = vperm.xlu0 %861, %v953_v2   ;;  %800 = vmatpush3.msra.mxu0 %v391_v20 }
  0x1d   :  { %180 = vperm.xlu1 %862, %v157_v14   ;;  %801 = vmatprep.subr.mxu0 %v390_v21  ;;  %vm340_vm2 = vcmp.eq.s32.totalorder %v1061_v13, 60 }
  0x1e   :  { %802 = vmatpush3.msra.mxu0 %v390_v21  ;;  %831 = vmatprep.subr.mxu1 %v92_v55 }
  0x1f   :  { %803 = vmatprep.subr.mxu0 %v389_v23  ;;  %832 = vmatpush3.msra.mxu1 %v92_v55 }
  0x20   :  { %271 = vperm.xlu0 %861, %v252_v17   ;;  %804 = vmatpush3.msra.mxu0 %v389_v23 }
  0x21   :  { %274 = vperm.xlu1 %862, %v253_v19   ;;  %833 = vmatprep.subr.mxu1 %v91_v56 }
  0x22   :  { %834 = vmatpush3.msra.mxu1 %v91_v56 }
  0x23   :  { %835 = vmatprep.subr.mxu1 %v90_v58 }
  0x24   :  { %104 = vperm.xlu0 %861, %v966_v6   ;;  %836 = vmatpush3.msra.mxu1 %v90_v58  ;;  %v85_v6 = vld [vmem:[%s1187_s1 + $0x10] sm:$0xff] }
  0x25   :  { %183 = vperm.xlu1 %862, %v158_v22   ;;  %837 = vmatprep.subr.mxu1 %v89_v59 }
  0x26   :  { %838 = vmatpush3.msra.mxu1 %v89_v59 }
  0x27   :  { %839 = vmatprep.subr.mxu1 %v88_v60 }
  0x28   :  { %107 = vperm.xlu0 %861, %v958_v3   ;;  %840 = vmatpush3.msra.mxu1 %v88_v60  ;;  %v67_v3 = vadd.s32 72, %v974_v12 }
  0x29   :  { %186 = vperm.xlu1 %862, %v159_v25   ;;  %841 = vmatprep.subr.mxu1 %v87_v63 }
  0x2a   :  { %842 = vmatpush3.msra.mxu1 %v87_v63 }
  0x2b   :  { %843 = vmatprep.subr.mxu1 %v86_v5 }
  0x2c   :  { %277 = vperm.xlu0 %861, %v254_v27   ;;  %844 = vmatpush3.msra.mxu1 %v86_v5 }
  0x2d   :  { %280 = vperm.xlu1 %862, %v255_v28   ;;  %845 = vmatprep.subr.mxu1 %v85_v6 }
  0x2e   :  { %846 = vmatpush3.msra.mxu1 %v85_v6 }
  0x30   :  { %110 = vperm.xlu0 %861, %v974_v12  }
  0x31   :  { %189 = vperm.xlu1 %862, %v160_v29  }
  0x34   :  { %113 = vperm.xlu0 %861, %v980_v15  }
  0x35   :  { %192 = vperm.xlu1 %862, %v161_v31  }
  0x38   :  { %283 = vperm.xlu0 %861, %v256_v33  }
  0x39   :  { %286 = vperm.xlu1 %862, %v257_v34  }
  0x3c   :  { %116 = vperm.xlu0 %861, %v35_v24  }
  0x3d   :  { %195 = vperm.xlu1 %862, %v162_v35  }
  0x40   :  { %119 = vperm.xlu0 %861, %v36_v26  }
  0x41   :  { %198 = vperm.xlu1 %862, %v163_v37  }
  0x44   :  { %289 = vperm.xlu0 %861, %v258_v39  }
  0x45   :  { %292 = vperm.xlu1 %862, %v259_v40  }
  0x48   :  { %122 = vperm.xlu0 %861, %v37_v30  }
  0x49   :  { %201 = vperm.xlu1 %862, %v164_v41  }
  0x4c   :  { %125 = vperm.xlu0 %861, %v38_v32  }
  0x4d   :  { %204 = vperm.xlu1 %862, %v165_v43  }
  0x50   :  { %295 = vperm.xlu0 %861, %v260_v45  }
  0x51   :  { %298 = vperm.xlu1 %862, %v261_v46  }
  0x54   :  { %128 = vperm.xlu0 %861, %v39_v36  }
  0x55   :  { %207 = vperm.xlu1 %862, %v166_v47  }
  0x58   :  { %131 = vperm.xlu0 %861, %v40_v38  }
  0x59   :  { %210 = vperm.xlu1 %862, %v167_v49  }
  0x5c   :  { %301 = vperm.xlu0 %861, %v262_v51  }
  0x5d   :  { %304 = vperm.xlu1 %862, %v263_v52  }
  0x60   :  { %134 = vperm.xlu0 %861, %v41_v42  }
  0x61   :  { %213 = vperm.xlu1 %862, %v168_v54  }
  0x64   :  { %137 = vperm.xlu0 %861, %v42_v44  }
  0x65   :  { %216 = vperm.xlu1 %862, %v169_v57  }
  0x68   :  { %863 = vset.pattern.permute.xlu0 %v914_v62 }
  0x69   :  { %48 = vperm.xlu0 %863, %v948_v1   ;;  %864 = vset.pattern.permute.xlu1 %v914_v62  ;;  %v84_v1 = vld [vmem:[%s1187_s1 + $0x8] sm:$0xff]  ;;  %s916_s1 = smov [#allocation5]  }
  0x6a   :  { %58 = vperm.xlu1 %864, %v55_v61   ;;  %847 = vmatprep.subr.mxu1 %v84_v1  ;;  %s702_s20 = sshll.u32 %s916_s1, 4  ;;  %s703_s20 = int_to_ptr.vmem [resolvable:$true] %s702_s20 }
  0x6b   :  { %848 = vmatpush3.msra.mxu1 %v84_v1  ;;  %s886_s21 = scalar_lea.vmem %s703_s20, 256  ;;  %p891_p6 = scmp.lt.s32.totalorder %s703_s20, %s703_s20 }
  0x6c   :  { %849 = vmatprep.subr.mxu1 %v83_v8  ;;  %p887_p5 = scmp.ne.s32.totalorder %s703_s20, %s886_s21  ;;  %p892_p7 = scmp.lt.s32.totalorder %s886_s21, %s886_s21 }
  0x6d   :  { %61 = vperm.xlu0 %863, %v56_v4   ;;  %850 = vmatpush3.msra.mxu1 %v83_v8 }
  0x6e   :  { %51 = vperm.xlu1 %864, %v953_v2   ;;  %p893_p8 = por %p892_p7, %p891_p6 }
  0x70   :  { %p894_p9 = pnand %p893_p8, %p887_p5 }
  0x71   :  { %73 = vperm.xlu0 %863, %v68_v7  }
  0x72   :  { %70 = vperm.xlu1 %864, %v67_v3  }
  0x75   :  { %865 = vset.pattern.permute.xlu0 %v913_v0 }
  0x8b   :  { %v99_v10 = vpop.permute.xlu0 %98 }
  0x8c   :  { %v175_v11 = vpop.permute.xlu1 %174  ;;  %vm140_vm13 = vcmp.eq.s32.totalorder %v1061_v13, %v99_v10 }
  0x8d   :  { %vm219_vm3 = vcmp.eq.s32.totalorder %v1061_v13, %v175_v11 }
  0x8f   :  { %v172_v2 = vpop.permute.xlu0 %171 }
  0x90   :  { %v269_v12 = vpop.permute.xlu1 %268  ;;  %vm218_vm6 = vcmp.eq.s32.totalorder %v1061_v13, %v172_v2 }
  0x91   :  { %vm310_vm4 = vcmp.eq.s32.totalorder %v1061_v13, %v269_v12 }
  0x92   :  { %vm325_vm5 = vmor %vm219_vm3, %vm310_vm4 }
  0x93   :  { %v266_v14 = vpop.permute.xlu0 %265  ;;  %vm342_vm7 = vmor %vm325_vm5, %vm340_vm2 }
  0x94   :  { %vm309_vm8 = vcmp.eq.s32.totalorder %v1061_v13, %v266_v14  ;;  %v178_v0 = vpop.permute.xlu1 %177  ;;  %v717_v18 = vsel %vm342_vm7, 1.0, %v915_v16 }
  0x95   :  { %vm324_vm9 = vmor %vm218_vm6, %vm309_vm8  ;;  %vm220_vm12 = vcmp.eq.s32.totalorder %v1061_v13, %v178_v0 }
  0x96   :  { %vm341_vm11 = vmor %vm324_vm9, %vm340_vm2 }
  0x97   :  { %v102_v15 = vpop.permute.xlu0 %101  ;;  %v716_v17 = vsel %vm341_vm11, 1.0, %v915_v16  ;;  %vm236_vm15 = vmor %vm140_vm13, %vm220_vm12 }
  0x98   :  { %805 = vmatprep.mubr.msk.f32.mxu0 %vm397_vm10, %v716_v17  ;;  %v181_v19 = vpop.permute.xlu1 %180  ;;  %vm141_vm0 = vcmp.eq.s32.totalorder %v1061_v13, %v102_v15 }
  0x99   :  { %806 = vmatmul.mubr.msk.f32.vlgmr.msra.gmra.mxu0 %vm397_vm10, %v717_v18  ;;  %vm221_vm14 = vcmp.eq.s32.totalorder %v1061_v13, %v181_v19 }
  0x9a   :  { %vm237_vm1 = vmor %vm141_vm0, %vm221_vm14 }
  0x9b   :  { %v272_v20 = vpop.permute.xlu0 %271 }
  0x9c   :  { %vm311_vm3 = vcmp.eq.s32.totalorder %v1061_v13, %v272_v20  ;;  %v275_v21 = vpop.permute.xlu1 %274 }
  0x9d   :  { %vm326_vm4 = vmor %vm236_vm15, %vm311_vm3  ;;  %vm312_vm6 = vcmp.eq.s32.totalorder %v1061_v13, %v275_v21 }
  0x9e   :  { %vm343_vm5 = vmor %vm326_vm4, %vm340_vm2 }
  0x9f   :  { %vm327_vm7 = vmor %vm237_vm1, %vm312_vm6  ;;  %v105_v22 = vpop.permute.xlu0 %104  ;;  %v718_v23 = vsel %vm343_vm5, 1.0, %v915_v16 }
  0xa0   :  { %vm344_vm8 = vmor %vm327_vm7, %vm340_vm2  ;;  %808 = vmatprep.mubr.msk.f32.mxu0 %vm397_vm10, %v718_v23  ;;  %v184_v24 = vpop.permute.xlu1 %183  ;;  %vm142_vm11 = vcmp.eq.s32.totalorder %v1061_v13, %v105_v22 }
  0xa1   :  { %v719_v25 = vsel %vm344_vm8, 1.0, %v915_v16  ;;  %vm222_vm9 = vcmp.eq.s32.totalorder %v1061_v13, %v184_v24 }
  0xa2   :  { %809 = vmatmul.mubr.msk.f32.gmra.mxu0 %vm397_vm10, %v719_v25  ;;  %vm238_vm13 = vmor %vm142_vm11, %vm222_vm9 }
  0xa3   :  { %v108_v26 = vpop.permute.xlu0 %107 }
  0xa4   :  { %v187_v27 = vpop.permute.xlu1 %186  ;;  %vm143_vm14 = vcmp.eq.s32.totalorder %v1061_v13, %v108_v26 }
  0xa5   :  { %vm223_vm12 = vcmp.eq.s32.totalorder %v1061_v13, %v187_v27 }
  0xa6   :  { %vm239_vm15 = vmor %vm143_vm14, %vm223_vm12 }
  0xa7   :  { %v278_v28 = vpop.permute.xlu0 %277 }
  0xa8   :  { %vm313_vm0 = vcmp.eq.s32.totalorder %v1061_v13, %v278_v28  ;;  %v281_v29 = vpop.permute.xlu1 %280 }
  0xa9   :  { %vm328_vm1 = vmor %vm238_vm13, %vm313_vm0  ;;  %vm314_vm4 = vcmp.eq.s32.totalorder %v1061_v13, %v281_v29 }
  0xaa   :  { %vm345_vm3 = vmor %vm328_vm1, %vm340_vm2 }
  0xab   :  { %vm329_vm5 = vmor %vm239_vm15, %vm314_vm4  ;;  %v111_v30 = vpop.permute.xlu0 %110  ;;  %v720_v31 = vsel %vm345_vm3, 1.0, %v915_v16 }
  0xac   :  { %vm346_vm6 = vmor %vm329_vm5, %vm340_vm2  ;;  %811 = vmatprep.mubr.msk.f32.mxu0 %vm397_vm10, %v720_v31  ;;  %v190_v32 = vpop.permute.xlu1 %189  ;;  %vm144_vm8 = vcmp.eq.s32.totalorder %v1061_v13, %v111_v30 }
  0xad   :  { %v721_v33 = vsel %vm346_vm6, 1.0, %v915_v16  ;;  %vm224_vm7 = vcmp.eq.s32.totalorder %v1061_v13, %v190_v32 }
  0xae   :  { %812 = vmatmul.mubr.msk.f32.gmra.mxu0 %vm397_vm10, %v721_v33  ;;  %vm240_vm11 = vmor %vm144_vm8, %vm224_vm7 }
  0xaf   :  { %v114_v34 = vpop.permute.xlu0 %113 }
  0xb0   :  { %v193_v35 = vpop.permute.xlu1 %192  ;;  %vm145_vm12 = vcmp.eq.s32.totalorder %v1061_v13, %v114_v34 }
  0xb1   :  { %vm225_vm9 = vcmp.eq.s32.totalorder %v1061_v13, %v193_v35 }
  0xb2   :  { %vm241_vm13 = vmor %vm145_vm12, %vm225_vm9 }
  0xb3   :  { %v284_v36 = vpop.permute.xlu0 %283 }
  0xb4   :  { %vm315_vm14 = vcmp.eq.s32.totalorder %v1061_v13, %v284_v36  ;;  %v287_v37 = vpop.permute.xlu1 %286 }
  0xb5   :  { %vm330_vm15 = vmor %vm240_vm11, %vm315_vm14  ;;  %vm316_vm1 = vcmp.eq.s32.totalorder %v1061_v13, %v287_v37 }
  0xb6   :  { %vm347_vm0 = vmor %vm330_vm15, %vm340_vm2 }
  0xb7   :  { %vm331_vm3 = vmor %vm241_vm13, %vm316_vm1  ;;  %v117_v38 = vpop.permute.xlu0 %116  ;;  %v722_v39 = vsel %vm347_vm0, 1.0, %v915_v16 }
  0xb8   :  { %vm348_vm4 = vmor %vm331_vm3, %vm340_vm2  ;;  %814 = vmatprep.mubr.msk.f32.mxu0 %vm397_vm10, %v722_v39  ;;  %v196_v40 = vpop.permute.xlu1 %195  ;;  %vm146_vm6 = vcmp.eq.s32.totalorder %v1061_v13, %v117_v38 }
  0xb9   :  { %v723_v41 = vsel %vm348_vm4, 1.0, %v915_v16  ;;  %vm226_vm5 = vcmp.eq.s32.totalorder %v1061_v13, %v196_v40 }
  0xba   :  { %815 = vmatmul.mubr.msk.f32.gmra.mxu0 %vm397_vm10, %v723_v41  ;;  %vm242_vm8 = vmor %vm146_vm6, %vm226_vm5 }
  0xbb   :  { %v120_v42 = vpop.permute.xlu0 %119 }
  0xbc   :  { %v199_v43 = vpop.permute.xlu1 %198  ;;  %vm147_vm9 = vcmp.eq.s32.totalorder %v1061_v13, %v120_v42 }
  0xbd   :  { %vm227_vm7 = vcmp.eq.s32.totalorder %v1061_v13, %v199_v43 }
  0xbe   :  { %vm243_vm11 = vmor %vm147_vm9, %vm227_vm7 }
  0xbf   :  { %v290_v44 = vpop.permute.xlu0 %289 }
  0xc0   :  { %vm317_vm12 = vcmp.eq.s32.totalorder %v1061_v13, %v290_v44  ;;  %v293_v45 = vpop.permute.xlu1 %292 }
  0xc1   :  { %vm332_vm13 = vmor %vm242_vm8, %vm317_vm12  ;;  %vm318_vm15 = vcmp.eq.s32.totalorder %v1061_v13, %v293_v45 }
  0xc2   :  { %vm349_vm14 = vmor %vm332_vm13, %vm340_vm2 }
  0xc3   :  { %vm333_vm0 = vmor %vm243_vm11, %vm318_vm15  ;;  %v123_v46 = vpop.permute.xlu0 %122  ;;  %v724_v47 = vsel %vm349_vm14, 1.0, %v915_v16 }
  0xc4   :  { %vm350_vm1 = vmor %vm333_vm0, %vm340_vm2  ;;  %817 = vmatprep.mubr.msk.f32.mxu0 %vm397_vm10, %v724_v47  ;;  %v202_v48 = vpop.permute.xlu1 %201  ;;  %vm148_vm4 = vcmp.eq.s32.totalorder %v1061_v13, %v123_v46 }
  0xc5   :  { %v725_v49 = vsel %vm350_vm1, 1.0, %v915_v16  ;;  %vm228_vm3 = vcmp.eq.s32.totalorder %v1061_v13, %v202_v48 }
  0xc6   :  { %818 = vmatmul.mubr.msk.f32.gmra.mxu0 %vm397_vm10, %v725_v49  ;;  %vm244_vm6 = vmor %vm148_vm4, %vm228_vm3 }
  0xc7   :  { %v126_v50 = vpop.permute.xlu0 %125 }
  0xc8   :  { %v205_v51 = vpop.permute.xlu1 %204  ;;  %vm149_vm7 = vcmp.eq.s32.totalorder %v1061_v13, %v126_v50 }
  0xc9   :  { %vm229_vm5 = vcmp.eq.s32.totalorder %v1061_v13, %v205_v51 }
  0xca   :  { %vm245_vm8 = vmor %vm149_vm7, %vm229_vm5 }
  0xcb   :  { %v296_v52 = vpop.permute.xlu0 %295 }
  0xcc   :  { %vm319_vm9 = vcmp.eq.s32.totalorder %v1061_v13, %v296_v52  ;;  %v299_v53 = vpop.permute.xlu1 %298 }
  0xcd   :  { %vm334_vm11 = vmor %vm244_vm6, %vm319_vm9  ;;  %vm320_vm13 = vcmp.eq.s32.totalorder %v1061_v13, %v299_v53 }
  0xce   :  { %vm351_vm12 = vmor %vm334_vm11, %vm340_vm2 }
  0xcf   :  { %vm335_vm14 = vmor %vm245_vm8, %vm320_vm13  ;;  %v129_v54 = vpop.permute.xlu0 %128  ;;  %v726_v55 = vsel %vm351_vm12, 1.0, %v915_v16 }
  0xd0   :  { %vm352_vm15 = vmor %vm335_vm14, %vm340_vm2  ;;  %820 = vmatprep.mubr.msk.f32.mxu0 %vm397_vm10, %v726_v55  ;;  %v208_v56 = vpop.permute.xlu1 %207  ;;  %vm150_vm1 = vcmp.eq.s32.totalorder %v1061_v13, %v129_v54 }
  0xd1   :  { %v727_v57 = vsel %vm352_vm15, 1.0, %v915_v16  ;;  %vm230_vm0 = vcmp.eq.s32.totalorder %v1061_v13, %v208_v56 }
  0xd2   :  { %821 = vmatmul.mubr.msk.f32.gmra.mxu0 %vm397_vm10, %v727_v57  ;;  %vm246_vm4 = vmor %vm150_vm1, %vm230_vm0 }
  0xd3   :  { %v132_v58 = vpop.permute.xlu0 %131 }
  0xd4   :  { %v211_v59 = vpop.permute.xlu1 %210  ;;  %vm151_vm5 = vcmp.eq.s32.totalorder %v1061_v13, %v132_v58 }
  0xd5   :  { %vm231_vm3 = vcmp.eq.s32.totalorder %v1061_v13, %v211_v59 }
  0xd6   :  { %vm247_vm6 = vmor %vm151_vm5, %vm231_vm3 }
  0xd7   :  { %v302_v60 = vpop.permute.xlu0 %301 }
  0xd8   :  { %vm321_vm7 = vcmp.eq.s32.totalorder %v1061_v13, %v302_v60  ;;  %v305_v61 = vpop.permute.xlu1 %304 }
  0xd9   :  { %vm336_vm8 = vmor %vm246_vm4, %vm321_vm7  ;;  %vm322_vm11 = vcmp.eq.s32.totalorder %v1061_v13, %v305_v61 }
  0xda   :  { %vm353_vm9 = vmor %vm336_vm8, %vm340_vm2 }
  0xdb   :  { %vm337_vm12 = vmor %vm247_vm6, %vm322_vm11  ;;  %v135_v62 = vpop.permute.xlu0 %134  ;;  %v728_v63 = vsel %vm353_vm9, 1.0, %v915_v16 }
  0xdc   :  { %vm354_vm13 = vmor %vm337_vm12, %vm340_vm2  ;;  %823 = vmatprep.mubr.msk.f32.mxu0 %vm397_vm10, %v728_v63  ;;  %v214_v4 = vpop.permute.xlu1 %213  ;;  %vm152_vm14 = vcmp.eq.s32.totalorder %v1061_v13, %v135_v62 }
  0xdd   :  { %v729_v5 = vsel %vm354_vm13, 1.0, %v915_v16  ;;  %vm232_vm15 = vcmp.eq.s32.totalorder %v1061_v13, %v214_v4 }
  0xde   :  { %824 = vmatmul.mubr.msk.f32.gmra.mxu0 %vm397_vm10, %v729_v5  ;;  %vm248_vm0 = vmor %vm152_vm14, %vm232_vm15 }
  0xdf   :  { %v138_v6 = vpop.permute.xlu0 %137  ;;  %vm355_vm1 = vmor %vm248_vm0, %vm340_vm2 }
  0xe0   :  { %v217_v7 = vpop.permute.xlu1 %216  ;;  %v730_v1 = vsel %vm355_vm1, 1.0, %v915_v16  ;;  %vm153_vm3 = vcmp.eq.s32.totalorder %v1061_v13, %v138_v6 }
  0xe1   :  { %vm233_vm4 = vcmp.eq.s32.totalorder %v1061_v13, %v217_v7  ;;  %826 = vmatprep.mubr.msk.f32.mxu0 %vm397_vm10, %v730_v1 }
  0xe2   :  { %vm249_vm5 = vmor %vm153_vm3, %vm233_vm4 }
  0xe3   :  { %vm356_vm6 = vmor %vm249_vm5, %vm340_vm2 }
  0xe4   :  { %v49_v3 = vpop.permute.xlu0 %48  ;;  %v731_v8 = vsel %vm356_vm6, 1.0, %v915_v16 }
  0xe5   :  { %v59_v9 = vpop.permute.xlu1 %58  ;;  %827 = vmatmul.mubr.msk.f32.gmra.mxu0 %vm397_vm10, %v731_v8  ;;  %vm53_vm7 = vcmp.eq.s32.totalorder %v1061_v13, %v49_v3  ;;  %vm609_vm10 = vcmask 687104  }
  0xe6   :  { %vm63_vm8 = vcmp.eq.s32.totalorder %v1061_v13, %v59_v9 }
  0xe7   :  { %vm65_vm13 = vmor %vm53_vm7, %vm63_vm8 }
  0xe8   :  { %v62_v10 = vpop.permute.xlu0 %61 }
  0xe9   :  { %v52_v11 = vpop.permute.xlu1 %51  ;;  %vm64_vm9 = vcmp.eq.s32.totalorder %v1061_v13, %v62_v10 }
  0xea   :  { %vm54_vm11 = vcmp.eq.s32.totalorder %v1061_v13, %v52_v11 }
  0xeb   :  { %vm66_vm12 = vmor %vm54_vm11, %vm64_vm9 }
  0xec   :  { %v74_v2 = vpop.permute.xlu0 %73 }
  0xed   :  { %vm76_vm2 = vcmp.eq.s32.totalorder %v1061_v13, %v74_v2  ;;  %v71_v12 = vpop.permute.xlu1 %70 }
  0xee   :  { %vm78_vm14 = vmor %vm66_vm12, %vm76_vm2  ;;  %vm75_vm15 = vcmp.eq.s32.totalorder %v1061_v13, %v71_v12 }
  0xef   :  { %vm77_vm0 = vmor %vm65_vm13, %vm75_vm15  ;;  %v715_v0 = vsel %vm78_vm14, 1.0, %v915_v16 }
  0xf0   :  { %v714_v14 = vsel %vm77_vm0, 1.0, %v915_v16 }
  0xf1   :  { %851 = vmatprep.mubr.msk.f32.mxu1 %vm609_vm10, %v714_v14 }
  0xf2   :  { %852 = vmatmul.mubr.msk.f32.vlgmr.msra.gmra.mxu1 %vm609_vm10, %v715_v0 }
 0x159   :  { %v807_v15 = vpop.f32.mrf.mxu0 }
 0x15b   :  { %v516_v17 = vpop.f32.mrf.mxu0 }
 0x162   :  { %v810_v18 = vpop.f32.mrf.mxu0 }
 0x163   :  { %v596_v27 = vmax.f32 %v807_v15, %v810_v18 }
 0x164   :  { %v526_v19 = vpop.f32.mrf.mxu0 }
 0x165   :  { %v595_v29 = vmax.f32 %v516_v17, %v526_v19 }
 0x16e   :  { %v813_v20 = vpop.f32.mrf.mxu0 }
 0x16f   :  { %v598_v30 = vmax.f32 %v596_v27, %v813_v20 }
 0x170   :  { %v536_v21 = vpop.f32.mrf.mxu0 }
 0x171   :  { %v597_v31 = vmax.f32 %v595_v29, %v536_v21 }
 0x17a   :  { %v816_v22 = vpop.f32.mrf.mxu0 }
 0x17b   :  { %v600_v16 = vmax.f32 %v598_v30, %v816_v22 }
 0x17c   :  { %v546_v23 = vpop.f32.mrf.mxu0 }
 0x17d   :  { %v599_v33 = vmax.f32 %v597_v31, %v546_v23 }
 0x186   :  { %v819_v24 = vpop.f32.mrf.mxu0 }
 0x187   :  { %v602_v34 = vmax.f32 %v600_v16, %v819_v24 }
 0x188   :  { %v556_v25 = vpop.f32.mrf.mxu0 }
 0x189   :  { %v601_v36 = vmax.f32 %v599_v33, %v556_v25 }
 0x192   :  { %v822_v26 = vpop.f32.mrf.mxu0 }
 0x193   :  { %v604_v37 = vmax.f32 %v602_v34, %v822_v26 }
 0x194   :  { %v566_v13 = vpop.f32.mrf.mxu0 }
 0x195   :  { %v603_v38 = vmax.f32 %v601_v36, %v566_v13 }
 0x19e   :  { %v825_v28 = vpop.f32.mrf.mxu0 }
 0x19f   :  { %v606_v39 = vmax.f32 %v604_v37, %v825_v28 }
 0x1a0   :  { %v576_v32 = vpop.f32.mrf.mxu0 }
 0x1a1   :  { %v605_v41 = vmax.f32 %v603_v38, %v576_v32 }
 0x1a5   :  { %v828_v35 = vpop.f32.mrf.mxu0 }
 0x1a6   :  { %v608_v42 = vmax.f32 %v606_v39, %v828_v35 }
 0x1a7   :  { %v586_v40 = vpop.f32.mrf.mxu0 }
 0x1a8   :  { %v607_v44 = vmax.f32 %v605_v41, %v586_v40 }
 0x1b2   :  { %v853_v43 = vpop.f32.mrf.mxu1 }
 0x1b3   :  { %v692_v45 = vadd.f32 %v853_v43, %v608_v42 }
 0x1b4   :  { %v686_v46 = vpop.f32.mrf.mxu1 }
 0x1b5   :  { %696 = vst [vmem:[#allocation5 + $0x8] sm:$0xff] %v692_v45  ;;  %v687_v47 = vadd.f32 %v686_v46, %v607_v44 }
 0x1b7   :  { %695 = vst [vmem:[#allocation5] sm:$0xff] %v687_v47 }
 0x1b8   :  { %897 = shalt.err (!%p894_p9)
}
 0x1b9   :  { %708 = dma.vmem_to_hbm [thread:$0]  %s703_s20, 256, %s1189_s3, [#allocation4], %s911_s15, %s911_s15, %s912_s16  }
 0x1ba   :  { %908 = dma.done.wait [#allocation4], 256  }
 0x1bb   :  { %909 = vsyncadd [#allocation4], 4294967040 }
 0x1bc   :  { %712 = vsyncpa [#allocation3], 1 }
 0x1bd   :  { %713 = vsyncpa [#allocation4], 1 }

</bundles_post_ra>
